<compile_context>
chip_gen: v6e
topology: v6e:2x2x1
jax: 0.10.0
libtpu: 0.0.40
codegen_flags: <defaults>
</compile_context>

<pallas_src>
import functools

import jax
import jax.numpy as jnp
import numpy as np
from jax import lax
from jax.experimental import pallas as pl
from jax.experimental.pallas import tpu as pltpu


def _deconv_block_kernel(lhs_ref, w_ref, selm_ref, selt_ref, o_ref, *,
                         b_tile, m_s, eps):
    """Fused ConvTranspose2d + InstanceNorm2d(affine=False) + ReLU.

    lhs_ref  : (B_TILE*M_s, KK)      block-diagonal phase im2col rows (wrapper)
    w_ref    : (KK, Cout*OW)         stacked banded weights, resident in VMEM
    selm_ref : (Cout*OW, Cout)       0/1 channel selector, pre-scaled by 1/(OH*OW)
    selt_ref : (Cout, Cout*OW)       0/1 channel broadcaster
    o_ref    : (B_TILE*M_s, Cout*OW) lane-dense output rows
    """
    f32 = jnp.float32

    # --- transposed conv: ONE lane-dense MXU matmul for the whole block ------
    acc = jnp.dot(lhs_ref[...], w_ref[...], preferred_element_type=f32)
    # NOTE: ConvTranspose2d bias is intentionally omitted -- the following
    # InstanceNorm2d(affine=False) subtracts the per-channel mean, so a
    # per-channel constant is exactly cancelled and the variance is unchanged.

    sel_mean = selm_ref[...]          # (Cout*OW, Cout) f32, includes 1/(OH*OW)
    sel_bcast = selt_ref[...]         # (Cout, Cout*OW) f32

    # --- per-sample InstanceNorm stats + normalize + ReLU (static unroll) ----
    for s in range(b_tile):
        a = acc[s * m_s:(s + 1) * m_s, :]                      # aligned rows
        rsum = jnp.sum(a, axis=0, keepdims=True)               # (1, Cout*OW)
        rsq = jnp.sum(a * a, axis=0, keepdims=True)
        sq = jnp.concatenate([rsum, rsq], axis=0)              # (2, Cout*OW)
        ch = jnp.dot(sq, sel_mean, preferred_element_type=f32)  # (2, Cout): mean, E[x^2]
        ch_mean = ch[0:1, :]
        ch_var = jnp.maximum(ch[1:2, :] - ch_mean * ch_mean, 0.0)   # clamp
        ch_scale = lax.rsqrt(ch_var + eps)
        ms = jnp.concatenate([ch_mean, ch_scale], axis=0)       # (2, Cout)
        lanes = jnp.dot(ms, sel_bcast, preferred_element_type=f32)  # (2, Cout*OW)
        y = jnp.maximum((a - lanes[0:1, :]) * lanes[1:2, :], 0.0)
        # TODO(synk): training-mode Dropout would need pltpu.prng_seed /
        # pltpu.prng_random_bits with per-sample seeds; eval-mode is identity.
        o_ref[s * m_s:(s + 1) * m_s, :] = y.astype(o_ref.dtype)


def _phase_taps(kh, sh, ph):
    """Per y-phase list of (ky, row offset into the zero-padded input rows)."""
    per_ky = []
    for ky in range(kh):
        ry = (ky - ph) % sh
        d = (ry + ph - ky) // sh        # exact: ry + ph - ky is a multiple of sh
        per_ky.append((ky, ry, d))
    dmin = min(d for _, _, d in per_ky)
    dmax = max(d for _, _, d in per_ky)
    pad_top = max(0, -dmin)
    taps = [[] for _ in range(sh)]
    for ky, ry, d in per_ky:
        taps[ry].append((ky, pad_top + d))
    return taps, pad_top, dmax


def _build_banded_weights(weight, w_in, ow, sw, pw):
    """Fold the x-direction of the transposed conv into per-ky matrices.

    Returns B of shape (kh, W*Cin, Cout*OW) with
      B[ky, ix*Cin + ic, oc*OW + ox] = weight[ic, oc, ky, kx]
    whenever output column ox receives input column ix via tap (ky, kx);
    other entries are zero (redundant-but-free MXU MACs).
    """
    cin, cout, kh, kw = weight.shape
    entries = []
    for ky in range(kh):
        for ox in range(ow):
            for kx in range(kw):
                if (ox + pw - kx) % sw != 0:
                    continue
                ix = (ox + pw - kx) // sw
                if 0 <= ix < w_in:
                    entries.append((ky, ix, ox, kx))
    ent = np.asarray(entries, dtype=np.int32)
    ky_i, ix_i, ox_i, kx_i = ent[:, 0], ent[:, 1], ent[:, 2], ent[:, 3]
    vals = jnp.transpose(weight[:, :, ky_i, kx_i], (2, 0, 1))         # (L, Cin, Cout)
    rows = ix_i[:, None, None] * cin + np.arange(cin)[None, :, None]   # (L, Cin, 1)
    cols = np.arange(cout)[None, None, :] * ow + ox_i[:, None, None]   # (L, 1, Cout)
    kidx = ky_i[:, None, None]
    bmat = jnp.zeros((kh, w_in * cin, cout * ow), jnp.float32)
    return bmat.at[kidx, rows, cols].set(vals)


def _pick_b_tile(n):
    """Largest sample-batching factor keeping the grid length >= 2 (megacore)."""
    for cand in (4, 2):
        if n % cand == 0 and n // cand >= 2:
            return cand
    return 1


def deconv_block(x_nchw, weight, bias=None, *, stride, padding, eps=1e-5,
                 compute_dtype=jnp.bfloat16, b_tile=None,
                 return_native_layout=False):
    """ConvTranspose2d -> InstanceNorm2d(affine=False) -> ReLU -> Dropout(eval).

    x_nchw : (N, Cin, H, W)       float32
    weight : (Cin, Cout, kH, kW)  PyTorch ConvTranspose2d weight layout
    bias   : (Cout,) or None      accepted but unused (InstanceNorm cancels it)
    """
    del bias  # per-channel bias is a no-op under InstanceNorm2d(affine=False)

    n, cin, h, w = x_nchw.shape
    _, cout, kh, kw = weight.shape
    sh, sw = stride
    ph, pw = padding
    oh = (h - 1) * sh - 2 * ph + kh
    ow = (w - 1) * sw - 2 * pw + kw
    if oh % sh != 0:
        raise ValueError("y-phase decomposition needs OH % stride_h == 0")
    qh = oh // sh
    wc = w * cin
    n_col = cout * ow

    taps, pad_top, dmax = _phase_taps(kh, sh, ph)
    hp = pad_top + max(h, dmax + qh)
    kmax = max(len(t) for t in taps) * wc     # per-phase folded K (lane-dense)
    kk = sh * kmax                            # block-diagonal total K
    m_s = sh * qh                             # rows per sample == OH

    # --- wrapper glue: NCHW -> padded rows -> block-diag phase im2col --------
    x_rows = jnp.transpose(x_nchw, (0, 2, 3, 1)).reshape(n, h, wc)
    x_rows = jnp.pad(x_rows, ((0, 0), (pad_top, hp - pad_top - h), (0, 0)))
    phase_blocks = []
    for p, tap_list in enumerate(taps):
        lhs_p = jnp.concatenate([x_rows[:, dy:dy + qh, :] for _, dy in tap_list],
                                axis=-1)                      # (N, QH, ntaps*WC)
        left = p * kmax
        right = kk - left - lhs_p.shape[-1]
        phase_blocks.append(jnp.pad(lhs_p, ((0, 0), (0, 0), (left, right))))
    lhs_big = jnp.concatenate(phase_blocks, axis=1)           # (N, OH, KK)
    lhs_big = lhs_big.reshape(n * m_s, kk).astype(compute_dtype)

    # --- weights: per-ky banded matrices, stacked per phase along K ----------
    bmat = _build_banded_weights(weight, w, ow, sw, pw)       # (kh, WC, n_col) f32
    w_blocks = []
    for tap_list in taps:
        wp = jnp.concatenate([bmat[ky] for ky, _ in tap_list], axis=0)
        if wp.shape[0] < kmax:
            wp = jnp.pad(wp, ((0, kmax - wp.shape[0]), (0, 0)))
        w_blocks.append(wp)
    w_big = jnp.concatenate(w_blocks, axis=0).astype(compute_dtype)   # (KK, n_col)

    # --- InstanceNorm selector matrices (hoisted out of the kernel body) -----
    col_ch = np.arange(n_col) // ow
    sel_np = (col_ch[:, None] == np.arange(cout)[None, :]).astype(np.float32)
    sel_mean = jnp.asarray(sel_np / float(oh * ow))           # (n_col, Cout)
    sel_bcast = jnp.asarray(sel_np.T)                         # (Cout, n_col)

    if b_tile is None:
        b_tile = _pick_b_tile(n)
    assert n % b_tile == 0

    kernel = functools.partial(_deconv_block_kernel,
                               b_tile=b_tile, m_s=m_s, eps=eps)

    out2d = pl.pallas_call(
        kernel,
        out_shape=jax.ShapeDtypeStruct((n * m_s, n_col), jnp.float32),
        grid_spec=pltpu.PrefetchScalarGridSpec(
            num_scalar_prefetch=0,
            grid=(n // b_tile,),
            in_specs=[
                # B_TILE samples of block-diag im2col rows (auto double-buffered)
                pl.BlockSpec((b_tile * m_s, kk), lambda b: (b, 0)),
                # constant block index -> fetched once, resident in VMEM
                pl.BlockSpec((kk, n_col), lambda b: (0, 0)),
                pl.BlockSpec((n_col, cout), lambda b: (0, 0)),
                pl.BlockSpec((cout, n_col), lambda b: (0, 0)),
            ],
            out_specs=pl.BlockSpec((b_tile * m_s, n_col), lambda b: (b, 0)),
        ),
        # Batch axis "parallel": v7x megacore splits the (>= 2-long) grid across
        # its two TensorCores.  Per-step VMEM here is well under 1 MiB -- far
        # below every generation's scoped default.  Much larger images would
        # need OW tiling of w_big, an explicit vmem_limit_bytes re-derived
        # against v7x's 64 MiB physical VMEM, and a single-buffered weight tile.
        compiler_params=pltpu.CompilerParams(
            dimension_semantics=("parallel",)),
    )(lhs_big, w_big, sel_mean, sel_bcast)

    if return_native_layout:
        # Kernel-native lane-dense layout (N, sh, QH, Cout*OW): phase-major
        # rows, channel-major lanes.  Use when the consumer can accept it and
        # the NCHW depth-to-space pass below should be skipped.
        return out2d.reshape(n, sh, qh, n_col)

    # y-phase depth-to-space + back to NCHW (cheap wrapper glue).
    y = out2d.reshape(n, sh, qh, cout, ow)
    return jnp.transpose(y, (0, 3, 2, 1, 4)).reshape(n, cout, oh, ow)


def _reference(x, weight, bias, stride, padding, eps=1e-5):
    """Pure-JAX reference (lax conv with lhs_dilation == ConvTranspose2d)."""
    _, cout, kh, kw = weight.shape
    sh, sw = stride
    ph, pw = padding
    w_oihw = jnp.transpose(weight[:, :, ::-1, ::-1], (1, 0, 2, 3))
    y = lax.conv_general_dilated(
        x, w_oihw, window_strides=(1, 1),
        padding=[(kh - 1 - ph, kh - 1 - ph), (kw - 1 - pw, kw - 1 - pw)],
        lhs_dilation=(sh, sw),
        dimension_numbers=('NCHW', 'OIHW', 'NCHW'),
        precision=lax.Precision.HIGHEST)
    y = y + bias.reshape(1, cout, 1, 1)
    mean = jnp.mean(y, axis=(2, 3), keepdims=True)
    var = jnp.mean((y - mean) ** 2, axis=(2, 3), keepdims=True)
    y = (y - mean) * lax.rsqrt(var + eps)
    return jnp.maximum(y, 0.0)


if __name__ == "__main__":
    key = jax.random.PRNGKey(0)
    k1, k2, k3 = jax.random.split(key, 3)

    # DeconvBlock(in_channels=4, out_channels=8, kernel=(4,4), stride=(2,2),
    #             padding=(1,1), dropout=0.1):  x (2,4,16,16) -> (2,8,32,32)
    N, CIN, COUT, H, W = 2, 4, 8, 16, 16
    KERNEL, STRIDE, PADDING = (4, 4), (2, 2), (1, 1)

    x = jax.random.normal(k1, (N, CIN, H, W), jnp.float32)
    bound = 1.0 / float(np.sqrt(CIN * KERNEL[0] * KERNEL[1]))
    weight = jax.random.uniform(k2, (CIN, COUT, KERNEL[0], KERNEL[1]),
                                jnp.float32, -bound, bound)
    bias = jax.random.uniform(k3, (COUT,), jnp.float32, -bound, bound)

    ref = _reference(x, weight, bias, STRIDE, PADDING)

    # f32 MXU operands: tight check against the XLA reference (which adds the
    # bias; the kernel drops it -- InstanceNorm cancels it exactly).
    out = deconv_block(x, weight, bias, stride=STRIDE, padding=PADDING,
                       compute_dtype=jnp.float32)
    out = jax.block_until_ready(out)
    assert out.shape == (N, COUT, 2 * H, 2 * W), out.shape
    np.testing.assert_allclose(np.asarray(out), np.asarray(ref),
                               rtol=5e-4, atol=5e-4)

    # bf16 MXU operands (default; recommended on v6e/v7x), f32 accumulation.
    out_bf16 = deconv_block(x, weight, bias, stride=STRIDE, padding=PADDING,
                            compute_dtype=jnp.bfloat16)
    out_bf16 = jax.block_until_ready(out_bf16)
    np.testing.assert_allclose(np.asarray(out_bf16), np.asarray(ref),
                               rtol=5e-2, atol=5e-2)

    print("KERNEL_OK")
</pallas_src>

<mosaic_0001>
module attributes {stable_mosaic.version = 11 : i64} {
  func.func @_deconv_block_kernel(%arg0: i32, %arg1: memref<32x256xf32, #tpu.memory_space<vmem>>, %arg2: memref<256x256xf32, #tpu.memory_space<vmem>>, %arg3: memref<256x8xf32, #tpu.memory_space<vmem>>, %arg4: memref<8x256xf32, #tpu.memory_space<vmem>>, %arg5: memref<32x256xf32, #tpu.memory_space<vmem>>) attributes {dimension_semantics = [#tpu.dimension_semantics<parallel>], iteration_bounds = array<i64: 2>, scalar_prefetch = 0 : i64, scratch_operands = 0 : i64, tpu.core_type = #tpu.core_type<tc>, window_params = [{transform_indices = @transform_0, window_bounds = array<i64: 32, 256>}, {pipeline_mode = #tpu.pipeline_mode<synchronous>, transform_indices = @transform_1, window_bounds = array<i64: 256, 256>}, {pipeline_mode = #tpu.pipeline_mode<synchronous>, transform_indices = @transform_2, window_bounds = array<i64: 256, 8>}, {pipeline_mode = #tpu.pipeline_mode<synchronous>, transform_indices = @transform_3, window_bounds = array<i64: 8, 256>}, {transform_indices = @transform_4, window_bounds = array<i64: 32, 256>}]} {
    %c0 = arith.constant 0 : index
    %c0_0 = arith.constant 0 : index
    %0 = vector.load %arg1[%c0, %c0_0] : memref<32x256xf32, #tpu.memory_space<vmem>>, vector<32x256xf32>
    %c0_1 = arith.constant 0 : index
    %c0_2 = arith.constant 0 : index
    %1 = vector.load %arg2[%c0_1, %c0_2] : memref<256x256xf32, #tpu.memory_space<vmem>>, vector<256x256xf32>
    %cst = arith.constant dense<0.000000e+00> : vector<32x256xf32>
    %2 = tpu.matmul %0, %1, %cst {dimension_numbers = #tpu.dot_dimension_numbers<[1], [0], [0], [1], [0, 0, 1, 1], [], []>} : vector<32x256xf32>, vector<256x256xf32>, vector<32x256xf32> -> vector<32x256xf32>
    %c0_3 = arith.constant 0 : index
    %c0_4 = arith.constant 0 : index
    %3 = vector.load %arg3[%c0_3, %c0_4] : memref<256x8xf32, #tpu.memory_space<vmem>>, vector<256x8xf32>
    %c0_5 = arith.constant 0 : index
    %c0_6 = arith.constant 0 : index
    %4 = vector.load %arg4[%c0_5, %c0_6] : memref<8x256xf32, #tpu.memory_space<vmem>>, vector<8x256xf32>
    %cst_7 = arith.constant dense<0.000000e+00> : vector<256xf32>
    %5 = vector.multi_reduction <add>, %2, %cst_7 [0] : vector<32x256xf32> to vector<256xf32>
    %6 = vector.shape_cast %5 : vector<256xf32> to vector<1x256xf32>
    %7 = arith.mulf %2, %2 : vector<32x256xf32>
    %cst_8 = arith.constant dense<0.000000e+00> : vector<256xf32>
    %8 = vector.multi_reduction <add>, %7, %cst_8 [0] : vector<32x256xf32> to vector<256xf32>
    %9 = vector.shape_cast %8 : vector<256xf32> to vector<1x256xf32>
    %10 = tpu.concatenate %6, %9 in 0 : vector<1x256xf32>, vector<1x256xf32> -> vector<2x256xf32>
    %cst_9 = arith.constant dense<0.000000e+00> : vector<2x8xf32>
    %11 = tpu.matmul %10, %3, %cst_9 {dimension_numbers = #tpu.dot_dimension_numbers<[1], [0], [0], [1], [0, 0, 1, 1], [], []>} : vector<2x256xf32>, vector<256x8xf32>, vector<2x8xf32> -> vector<2x8xf32>
    %12 = vector.extract_strided_slice %11 {offsets = [0, 0], sizes = [1, 8], strides = [1, 1]} : vector<2x8xf32> to vector<1x8xf32>
    %13 = vector.extract_strided_slice %11 {offsets = [1, 0], sizes = [1, 8], strides = [1, 1]} : vector<2x8xf32> to vector<1x8xf32>
    %14 = arith.mulf %12, %12 : vector<1x8xf32>
    %15 = arith.subf %13, %14 : vector<1x8xf32>
    %cst_10 = arith.constant 0.000000e+00 : f32
    %16 = vector.broadcast %cst_10 : f32 to vector<1x8xf32>
    %17 = arith.maximumf %15, %16 : vector<1x8xf32>
    %cst_11 = arith.constant 9.99999974E-6 : f32
    %18 = vector.broadcast %cst_11 : f32 to vector<1x8xf32>
    %19 = arith.addf %17, %18 : vector<1x8xf32>
    %20 = math.rsqrt %19 : vector<1x8xf32>
    %21 = tpu.concatenate %12, %20 in 0 : vector<1x8xf32>, vector<1x8xf32> -> vector<2x8xf32>
    %cst_12 = arith.constant dense<0.000000e+00> : vector<2x256xf32>
    %22 = tpu.matmul %21, %4, %cst_12 {dimension_numbers = #tpu.dot_dimension_numbers<[1], [0], [0], [1], [0, 0, 1, 1], [], []>} : vector<2x8xf32>, vector<8x256xf32>, vector<2x256xf32> -> vector<2x256xf32>
    %23 = vector.extract_strided_slice %22 {offsets = [0, 0], sizes = [1, 256], strides = [1, 1]} : vector<2x256xf32> to vector<1x256xf32>
    %24 = vector.broadcast %23 : vector<1x256xf32> to vector<32x256xf32>
    %25 = arith.subf %2, %24 : vector<32x256xf32>
    %26 = vector.extract_strided_slice %22 {offsets = [1, 0], sizes = [1, 256], strides = [1, 1]} : vector<2x256xf32> to vector<1x256xf32>
    %27 = vector.broadcast %26 : vector<1x256xf32> to vector<32x256xf32>
    %28 = arith.mulf %25, %27 : vector<32x256xf32>
    %cst_13 = arith.constant 0.000000e+00 : f32
    %29 = vector.broadcast %cst_13 : f32 to vector<32x256xf32>
    %30 = arith.maximumf %28, %29 : vector<32x256xf32>
    %c0_14 = arith.constant 0 : index
    %c0_15 = arith.constant 0 : index
    %31 = vector.load %arg5[%c0_14, %c0_15] : memref<32x256xf32, #tpu.memory_space<vmem>>, vector<32x256xf32>
    tpu.vector_store %arg5[%c0_14, %c0_15], %30 {strides = array<i32>} : memref<32x256xf32, #tpu.memory_space<vmem>>, vector<32x256xf32>,
    return
  }
  func.func @transform_0(%arg0: i32) -> (i32, i32) {
    %c0_i32 = arith.constant 0 : i32
    %c0_i32_0 = arith.constant 0 : i32
    return %arg0, %c0_i32 : i32, i32
  }
  func.func @transform_1(%arg0: i32) -> (i32, i32) {
    %c0_i32 = arith.constant 0 : i32
    %c0_i32_0 = arith.constant 0 : i32
    %c0_i32_1 = arith.constant 0 : i32
    return %c0_i32, %c0_i32_0 : i32, i32
  }
  func.func @transform_2(%arg0: i32) -> (i32, i32) {
    %c0_i32 = arith.constant 0 : i32
    %c0_i32_0 = arith.constant 0 : i32
    %c0_i32_1 = arith.constant 0 : i32
    return %c0_i32, %c0_i32_0 : i32, i32
  }
  func.func @transform_3(%arg0: i32) -> (i32, i32) {
    %c0_i32 = arith.constant 0 : i32
    %c0_i32_0 = arith.constant 0 : i32
    %c0_i32_1 = arith.constant 0 : i32
    return %c0_i32, %c0_i32_0 : i32, i32
  }
  func.func @transform_4(%arg0: i32) -> (i32, i32) {
    %c0_i32 = arith.constant 0 : i32
    %c0_i32_0 = arith.constant 0 : i32
    return %arg0, %c0_i32 : i32, i32
  }
}

</mosaic_0001>

<bundles_post_ra>
// kernel: tpu_custom_call.1
= control target key start
LH: loop header
LB: loop body
LE: loop exit
PB: predicated region body
PF: predicated region fallthrough
CT: control target
= control target key end

     0   :  { %9 = vsyncpa [#allocation3], 0  ;;  %s1272_s0 = inlined_call_operand.vmem [shape: f32[64,256], index: 0, kind: input, shape index: {}]   ;;  %s1273_s1 = inlined_call_operand.hbm [shape: f32[256,256], index: 1, kind: input, shape index: {}]   ;;  %s1274_s2 = inlined_call_operand.vmem [shape: f32[256,8], index: 2, kind: input, shape index: {}]   ;;  %s1275_s3 = inlined_call_operand.vmem [shape: f32[8,256], index: 3, kind: input, shape index: {}]   ;;  %s1276_s4 = inlined_call_operand.hbm [shape: f32[64,256], index: 4, kind: output, shape index: {}]  }
   0x1   :  { %10 = vsyncpa [#allocation4], 0 }
   0x2   :  { %12 = vsyncpa [#allocation4 + $0x1], 0  ;;  %s986_s15 = smov 0   ;;  %s988_s16 = smov 0  }
   0x3   :  { %s990_s17 = smov 0   ;;  %s992_s18 = smov 0  }
   0x4 LB: > { %s1007_s19 = sadd.s32 4294967295, %s952_s18   ;;  %s750_s20 = sadd.s32 4294967294, %s952_s18   ;;  %s952_s18 = sphi %s992_s18, %s1284_s18   ;;  %s948_s17 = sphi %s990_s17, %s1283_s17   ;;  %s944_s16 = sphi %s988_s16, %s1282_s16   ;;  %s940_s15 = sphi %s986_s15, %s1281_s15  }
   0x5   : > { %s1011_s21 = sadd.s32 1, %s952_s18   ;;  %s114_s22 = sadd.s32 1, %s948_s17 }
   0x6   : > { %s111_s23 = ssub.s32 %s952_s18, %s1011_s21  ;;  %p124_p0 = scmp.ne.s32.totalorder %s948_s17, %s944_s16 }
   0x7   : > { %p112_p1 = scmp.eq.s32.totalorder %s111_s23, 0  ;;  %p125_p2 = scmp.eq.s32.totalorder %s1007_s19, 1 }
   0x8   : > { %p130_p3 = scmp.ne.s32.totalorder %s944_s16, %s940_s15  ;;  %p131_p4 = scmp.eq.s32.totalorder %s750_s20, 1 }
   0x9   : > { %s1022_s24 = scalar_select %p112_p1, %s948_s17, %s114_s22  }
   0xa   : > { %p1024_p5 = por %p125_p2, %p124_p0  ;;  %p1028_p6 = por %p131_p4, %p130_p3 }
   0xb   : > { %p751_p7 = scmp.ge.s32.totalorder %s952_s18, 1  ;;  %p138_p8 = scmp.lt.s32.totalorder %s952_s18, 3 }
   0xc   : > { %s1278_s26 = scalar_select %p1028_p6, 1, 0 }
   0xd   : > { %p819_p9 = scmp.eq.s32.totalorder %s1007_s19, 0  ;;  %p1035_p10 = pnand %p751_p7, %p138_p8 }
   0xe   : > { %s954_s28 = smov [#allocation2]  }
   0xf   : > { %s150_s29 = sshll.u32 %s954_s28, 4  ;;  %p811_p11 = pneg %p1035_p10  ;;  %s151_s29 = int_to_ptr.vmem [resolvable:$true] %s150_s29 }
  0x10   : > { %s873_s30 = scalar_lea.vmem %s151_s29, 8192  ;;  %p881_p3 = scmp.lt.s32.totalorder %s151_s29, %s151_s29 }
  0x11   : > { %p812_p12 = pnand %p819_p9, %p811_p11  ;;  %p874_p0 = scmp.ne.s32.totalorder %s151_s29, %s873_s30 }
  0x12   : > { %p882_p4 = scmp.lt.s32.totalorder %s873_s30, %s873_s30 }
  0x13   : > { %p864_p13 = pneg %p812_p12 }
  0x14   : > { %p883_p6 = por %p882_p4, %p881_p3 }
  0x15   : > { %p876_p1 = pnand %p874_p0, %p864_p13 }
  0x17   : > { %p877_p2 = pneg %p876_p1 }
  0x19   : > { %p884_p7 = pnand %p883_p6, %p877_p2 }
  0x1b   : > { %887 = shalt.err (!%p884_p7)
}
  0x1c   : > { %s955_s5 = smov 256   ;;  %s956_s6 = smov 16  }
  0x1d   : > { %814 = dma.hbm_to_vmem [thread:$0]  (!%p812_p12), %s1273_s1, 8192, %s151_s29, [#allocation3], %s955_s5, %s955_s5, %s956_s6  }
  0x1e   : > { %182 = sbr.rel (%p1035_p10) target bundleno = 767 (0x2ff), region = 36 }
  0x23   : > { %931 = dma.done.wait (%p819_p9), [#allocation3], 8192  }
  0x24   : > { %933 = vsyncadd (%p819_p9), [#allocation3], 4294959104  ;;  %v256_v0 = vld [vmem:[#allocation2 + $0xf8] sm:$0xff]  ;;  %v255_v1 = vld [vmem:[#allocation2 + $0xf0] sm:$0xff]  ;;  %s757_s9 = sshll.u32 %s1007_s19, 2  ;;  %vm456_vm0 = vcmask 1040384  }
  0x25   : > { %v254_v2 = vld [vmem:[#allocation2 + $0xe8] sm:$0xff]  ;;  %289 = vmatprep.subr.mxu0 %v256_v0  ;;  %v253_v3 = vld [vmem:[#allocation2 + $0xe0] sm:$0xff]  ;;  %v252_v4 = vld [vmem:[#allocation2 + $0xd8] sm:$0xff]  ;;  %p210_p6 = scmp.lt.s32.totalorder %s757_s9, 7  ;;  %vm538_vm1 = vcmask 64512   ;;  %s206_s14 = sand.u32 1, %s944_s16  }
  0x26   : > { %290 = vmatpush1.msra.mxu0 %v255_v1  ;;  %v251_v5 = vld [vmem:[#allocation2 + $0xd0] sm:$0xff]  ;;  %v250_v6 = vld [vmem:[#allocation2 + $0xc8] sm:$0xff]  ;;  %v249_v7 = vld [vmem:[#allocation2 + $0xc0] sm:$0xff]  ;;  %s756_s20 = sshll.u32 %s206_s14, 6  ;;  %s769_s22 = sshll.u32 %s1007_s19, 10 }
  0x27   : > { %291 = vmatprep.subr.mxu0 %v254_v2  ;;  %v248_v8 = vld [vmem:[#allocation2 + $0xb8] sm:$0xff]  ;;  %v247_v9 = vld [vmem:[#allocation2 + $0xb0] sm:$0xff]  ;;  %v246_v10 = vld [vmem:[#allocation2 + $0xa8] sm:$0xff]  ;;  %s1286_s9 = smov (!%p210_p6, %s757_s9), 7  ;;  %s208_s23 = scalar_lea.vmem [#allocation5], %s756_s20 }
  0x28   : > { %292 = vmatpush1.msra.mxu0 %v253_v3  ;;  %v245_v11 = vld [vmem:[#allocation2 + $0xa0] sm:$0xff]  ;;  %v244_v12 = vld [vmem:[#allocation2 + $0x98] sm:$0xff]  ;;  %v243_v13 = vld [vmem:[#allocation2 + $0x90] sm:$0xff]  ;;  %s767_s10 = sshll.u32 %s1286_s9, 4  ;;  %s676_s27 = sshll.u32 %s208_s23, 4  ;;  %s1228_s27 = int_to_ptr.vmem [resolvable:$true] %s676_s27 }
  0x29   : > { %293 = vmatprep.subr.mxu0 %v252_v4  ;;  %v242_v14 = vld [vmem:[#allocation2 + $0x88] sm:$0xff]  ;;  %v241_v15 = vld [vmem:[#allocation2 + $0x80] sm:$0xff]  ;;  %v240_v16 = vld [vmem:[#allocation2 + $0x78] sm:$0xff]  ;;  %s1056_s13 = scalar_lea.vmem %s1272_s0, %s767_s10  ;;  %s1226_s19 = scalar_lea.hbm %s1276_s4, %s769_s22 }
  0x2a   : > { %294 = vmatpush1.msra.mxu0 %v251_v5  ;;  %v239_v17 = vld [vmem:[#allocation2 + $0x70] sm:$0xff]  ;;  %v238_v18 = vld [vmem:[#allocation2 + $0x68] sm:$0xff]  ;;  %v237_v19 = vld [vmem:[#allocation2 + $0x60] sm:$0xff]  ;;  %s1232_s30 = scalar_lea.sflag [#allocation4], %s206_s14  ;;  %s888_s5 = scalar_lea.vmem %s1228_s27, 1024 }
  0x2b   : > { %295 = vmatprep.subr.mxu0 %v250_v6  ;;  %v236_v20 = vld [vmem:[#allocation2 + $0x58] sm:$0xff]  ;;  %v235_v21 = vld [vmem:[#allocation2 + $0x50] sm:$0xff]  ;;  %v234_v22 = vld [vmem:[#allocation2 + $0x48] sm:$0xff]  ;;  %p889_p8 = scmp.ne.s32.totalorder %s1228_s27, %s888_s5  ;;  %s958_s6 = smov [#allocation5]  }
  0x2c   : > { %296 = vmatpush1.msra.mxu0 %v249_v7  ;;  %v233_v23 = vld [vmem:[#allocation2 + $0x40] sm:$0xff]  ;;  %v218_v24 = vld [vmem:[%s1056_s13 + $0x8] sm:$0xff]  ;;  %v232_v25 = vld [vmem:[#allocation2 + $0x38] sm:$0xff]  ;;  %s892_s7 = sshll.u32 %s958_s6, 4  ;;  %s893_s7 = int_to_ptr.vmem [resolvable:$false] %s892_s7 }
  0x2d   : > { %297 = vmatprep.subr.mxu0 %v248_v8  ;;  %353 = vmatprep.mubr.f32.mxu0 %v218_v24  ;;  %v231_v26 = vld [vmem:[#allocation2 + $0x30] sm:$0xff]  ;;  %v230_v27 = vld [vmem:[#allocation2 + $0x28] sm:$0xff]  ;;  %v229_v28 = vld [vmem:[#allocation2 + $0x20] sm:$0xff]  ;;  %p890_p9 = pnand %p889_p8, %p1024_p5  ;;  %s894_s8 = scalar_lea.vmem %s893_s7, 2048 }
  0x2e   : > { %298 = vmatpush1.msra.mxu0 %v247_v9  ;;  %v228_v29 = vld [vmem:[#allocation2 + $0x18] sm:$0xff]  ;;  %v227_v30 = vld [vmem:[#allocation2 + $0x10] sm:$0xff]  ;;  %v226_v31 = vld [vmem:[#allocation2 + $0x8] sm:$0xff]  ;;  %p895_p11 = scmp.lt.s32.totalorder %s1228_s27, %s893_s7  ;;  %p896_p12 = scmp.lt.s32.totalorder %s894_s8, %s888_s5 }
  0x2f   : > { %299 = vmatprep.subr.mxu0 %v246_v10  ;;  %v225_v32 = vld [vmem:[#allocation2] sm:$0xff]  ;;  %v288_v33 = vld [vmem:[#allocation2 + $0x1f8] sm:$0xff]  ;;  %v287_v34 = vld [vmem:[#allocation2 + $0x1f0] sm:$0xff]  ;;  %p891_p10 = pneg %p890_p9 }
  0x30   : > { %300 = vmatpush1.msra.mxu0 %v245_v11  ;;  %v286_v35 = vld [vmem:[#allocation2 + $0x1e8] sm:$0xff]  ;;  %v285_v36 = vld [vmem:[#allocation2 + $0x1e0] sm:$0xff]  ;;  %v284_v37 = vld [vmem:[#allocation2 + $0x1d8] sm:$0xff]  ;;  %p897_p13 = por %p896_p12, %p895_p11 }
  0x31   : > { %301 = vmatprep.subr.mxu0 %v244_v12  ;;  %v283_v38 = vld [vmem:[#allocation2 + $0x1d0] sm:$0xff]  ;;  %v282_v39 = vld [vmem:[#allocation2 + $0x1c8] sm:$0xff]  ;;  %v281_v40 = vld [vmem:[#allocation2 + $0x1c0] sm:$0xff] }
  0x32   : > { %302 = vmatpush1.msra.mxu0 %v243_v13  ;;  %v280_v41 = vld [vmem:[#allocation2 + $0x1b8] sm:$0xff]  ;;  %v279_v42 = vld [vmem:[#allocation2 + $0x1b0] sm:$0xff]  ;;  %v278_v43 = vld [vmem:[#allocation2 + $0x1a8] sm:$0xff]  ;;  %p898_p0 = pnand %p897_p13, %p891_p10 }
  0x33   : > { %303 = vmatprep.subr.mxu0 %v242_v14  ;;  %v277_v44 = vld [vmem:[#allocation2 + $0x1a0] sm:$0xff]  ;;  %v276_v45 = vld [vmem:[#allocation2 + $0x198] sm:$0xff]  ;;  %v275_v46 = vld [vmem:[#allocation2 + $0x190] sm:$0xff] }
  0x34   : > { %304 = vmatpush1.msra.mxu0 %v241_v15  ;;  %v274_v47 = vld [vmem:[#allocation2 + $0x188] sm:$0xff]  ;;  %v273_v48 = vld [vmem:[#allocation2 + $0x180] sm:$0xff]  ;;  %v272_v49 = vld [vmem:[#allocation2 + $0x178] sm:$0xff] }
  0x35   : > { %305 = vmatprep.subr.mxu0 %v240_v16  ;;  %v271_v50 = vld [vmem:[#allocation2 + $0x170] sm:$0xff]  ;;  %v270_v51 = vld [vmem:[#allocation2 + $0x168] sm:$0xff]  ;;  %v269_v52 = vld [vmem:[#allocation2 + $0x160] sm:$0xff] }
  0x36   : > { %306 = vmatpush1.msra.mxu0 %v239_v17  ;;  %v268_v53 = vld [vmem:[#allocation2 + $0x158] sm:$0xff]  ;;  %v267_v54 = vld [vmem:[#allocation2 + $0x150] sm:$0xff]  ;;  %v266_v55 = vld [vmem:[#allocation2 + $0x148] sm:$0xff] }
  0x37   : > { %307 = vmatprep.subr.mxu0 %v238_v18  ;;  %v265_v56 = vld [vmem:[#allocation2 + $0x140] sm:$0xff]  ;;  %v264_v57 = vld [vmem:[#allocation2 + $0x138] sm:$0xff]  ;;  %v263_v58 = vld [vmem:[#allocation2 + $0x130] sm:$0xff] }
  0x38   : > { %308 = vmatpush1.msra.mxu0 %v237_v19  ;;  %v262_v59 = vld [vmem:[#allocation2 + $0x128] sm:$0xff]  ;;  %v261_v60 = vld [vmem:[#allocation2 + $0x120] sm:$0xff]  ;;  %v260_v61 = vld [vmem:[#allocation2 + $0x118] sm:$0xff] }
  0x39   : > { %309 = vmatprep.subr.mxu0 %v236_v20  ;;  %v259_v62 = vld [vmem:[#allocation2 + $0x110] sm:$0xff]  ;;  %v258_v63 = vld [vmem:[#allocation2 + $0x108] sm:$0xff]  ;;  %v257_v0 = vld [vmem:[#allocation2 + $0x100] sm:$0xff] }
  0x3a   : > { %310 = vmatpush1.msra.mxu0 %v235_v21  ;;  %v217_v1 = vld [vmem:[%s1056_s13] sm:$0xff]  ;;  %v220_v2 = vld [vmem:[%s1056_s13 + $0x18] sm:$0xff]  ;;  %v219_v3 = vld [vmem:[%s1056_s13 + $0x10] sm:$0xff] }
  0x3b   : > { %311 = vmatprep.subr.mxu0 %v234_v22  ;;  %v222_v4 = vld [vmem:[%s1056_s13 + $0x28] sm:$0xff]  ;;  %v221_v5 = vld [vmem:[%s1056_s13 + $0x20] sm:$0xff]  ;;  %v224_v6 = vld [vmem:[%s1056_s13 + $0x38] sm:$0xff] }
  0x3c   : > { %312 = vmatpush1.msra.mxu0 %v233_v23  ;;  %v223_v7 = vld [vmem:[%s1056_s13 + $0x30] sm:$0xff]  ;;  %v409_v8 = vld [vmem:[%s1274_s2 + $0xf8] sm:$0xff]  ;;  %v407_v12 = vld [vmem:[%s1274_s2 + $0xe8] sm:$0xff] }
  0x3d   : > { %313 = vmatprep.subr.mxu0 %v232_v25  ;;  %770 = vmatprep.subr.mxu1 %v409_v8  ;;  %v393_v9 = vld [vmem:[%s1274_s2 + $0x78] sm:$0xff]  ;;  %v408_v10 = vld [vmem:[%s1274_s2 + $0xf0] sm:$0xff]  ;;  %v391_v13 = vld [vmem:[%s1274_s2 + $0x68] sm:$0xff] }
  0x3e   : > { %314 = vmatpush1.msra.mxu0 %v231_v26  ;;  %771 = vmatpush3.msra.mxu1 %v393_v9  ;;  %v392_v11 = vld [vmem:[%s1274_s2 + $0x70] sm:$0xff]  ;;  %v406_v14 = vld [vmem:[%s1274_s2 + $0xe0] sm:$0xff]  ;;  %v405_v16 = vld [vmem:[%s1274_s2 + $0xd8] sm:$0xff] }
  0x3f   : > { %315 = vmatprep.subr.mxu0 %v230_v27  ;;  %772 = vmatprep.subr.mxu1 %v408_v10  ;;  %v390_v15 = vld [vmem:[%s1274_s2 + $0x60] sm:$0xff]  ;;  %v389_v17 = vld [vmem:[%s1274_s2 + $0x58] sm:$0xff]  ;;  %v404_v18 = vld [vmem:[%s1274_s2 + $0xd0] sm:$0xff] }
  0x40   : > { %316 = vmatpush1.msra.mxu0 %v229_v28  ;;  %773 = vmatpush3.msra.mxu1 %v392_v11  ;;  %v388_v19 = vld [vmem:[%s1274_s2 + $0x50] sm:$0xff]  ;;  %v403_v20 = vld [vmem:[%s1274_s2 + $0xc8] sm:$0xff]  ;;  %v402_v22 = vld [vmem:[%s1274_s2 + $0xc0] sm:$0xff] }
  0x41   : > { %317 = vmatprep.subr.mxu0 %v228_v29  ;;  %774 = vmatprep.subr.mxu1 %v407_v12  ;;  %v387_v21 = vld [vmem:[%s1274_s2 + $0x48] sm:$0xff]  ;;  %v386_v23 = vld [vmem:[%s1274_s2 + $0x40] sm:$0xff]  ;;  %v401_v24 = vld [vmem:[%s1274_s2 + $0xb8] sm:$0xff] }
  0x42   : > { %318 = vmatpush1.msra.mxu0 %v227_v30  ;;  %775 = vmatpush3.msra.mxu1 %v391_v13  ;;  %v385_v25 = vld [vmem:[%s1274_s2 + $0x38] sm:$0xff]  ;;  %v400_v26 = vld [vmem:[%s1274_s2 + $0xb0] sm:$0xff]  ;;  %v399_v28 = vld [vmem:[%s1274_s2 + $0xa8] sm:$0xff] }
  0x43   : > { %319 = vmatprep.subr.mxu0 %v226_v31  ;;  %776 = vmatprep.subr.mxu1 %v406_v14  ;;  %v384_v27 = vld [vmem:[%s1274_s2 + $0x30] sm:$0xff]  ;;  %v383_v29 = vld [vmem:[%s1274_s2 + $0x28] sm:$0xff]  ;;  %v398_v30 = vld [vmem:[%s1274_s2 + $0xa0] sm:$0xff] }
  0x44   : > { %320 = vmatpush1.msra.mxu0 %v225_v32  ;;  %777 = vmatpush3.msra.mxu1 %v390_v15  ;;  %v382_v31 = vld [vmem:[%s1274_s2 + $0x20] sm:$0xff]  ;;  %v397_v32 = vld [vmem:[%s1274_s2 + $0x98] sm:$0xff] }
  0x45   : > { %321 = vmatprep.subr.mxu0 %v288_v33  ;;  %778 = vmatprep.subr.mxu1 %v405_v16  ;;  %v381_v33 = vld [vmem:[%s1274_s2 + $0x18] sm:$0xff] }
  0x46   : > { %322 = vmatpush2.msra.mxu0 %v287_v34  ;;  %779 = vmatpush3.msra.mxu1 %v389_v17  ;;  %v396_v34 = vld [vmem:[%s1274_s2 + $0x90] sm:$0xff] }
  0x47   : > { %323 = vmatprep.subr.mxu0 %v286_v35  ;;  %780 = vmatprep.subr.mxu1 %v404_v18  ;;  %v380_v35 = vld [vmem:[%s1274_s2 + $0x10] sm:$0xff] }
  0x48   : > { %324 = vmatpush2.msra.mxu0 %v285_v36  ;;  %781 = vmatpush3.msra.mxu1 %v388_v19  ;;  %v395_v36 = vld [vmem:[%s1274_s2 + $0x88] sm:$0xff] }
  0x49   : > { %325 = vmatprep.subr.mxu0 %v284_v37  ;;  %782 = vmatprep.subr.mxu1 %v403_v20  ;;  %v379_v37 = vld [vmem:[%s1274_s2 + $0x8] sm:$0xff] }
  0x4a   : > { %326 = vmatpush2.msra.mxu0 %v283_v38  ;;  %783 = vmatpush3.msra.mxu1 %v387_v21  ;;  %v394_v38 = vld [vmem:[%s1274_s2 + $0x80] sm:$0xff] }
  0x4b   : > { %327 = vmatprep.subr.mxu0 %v282_v39  ;;  %784 = vmatprep.subr.mxu1 %v402_v22  ;;  %v378_v39 = vld [vmem:[%s1274_s2] sm:$0xff] }
  0x4c   : > { %328 = vmatpush2.msra.mxu0 %v281_v40  ;;  %785 = vmatpush3.msra.mxu1 %v386_v23 }
  0x4d   : > { %329 = vmatprep.subr.mxu0 %v280_v41  ;;  %786 = vmatprep.subr.mxu1 %v401_v24 }
  0x4e   : > { %330 = vmatpush2.msra.mxu0 %v279_v42  ;;  %787 = vmatpush3.msra.mxu1 %v385_v25 }
  0x4f   : > { %331 = vmatprep.subr.mxu0 %v278_v43  ;;  %788 = vmatprep.subr.mxu1 %v400_v26 }
  0x50   : > { %332 = vmatpush2.msra.mxu0 %v277_v44  ;;  %789 = vmatpush3.msra.mxu1 %v384_v27 }
  0x51   : > { %333 = vmatprep.subr.mxu0 %v276_v45  ;;  %790 = vmatprep.subr.mxu1 %v399_v28 }
  0x52   : > { %334 = vmatpush2.msra.mxu0 %v275_v46  ;;  %791 = vmatpush3.msra.mxu1 %v383_v29 }
  0x53   : > { %335 = vmatprep.subr.mxu0 %v274_v47  ;;  %792 = vmatprep.subr.mxu1 %v398_v30  ;;  %v411_v30 = vld [vmem:[%s1275_s3 + $0x8] sm:$0xff] }
  0x54   : > { %336 = vmatpush2.msra.mxu0 %v273_v48  ;;  %793 = vmatpush3.msra.mxu1 %v382_v31  ;;  %v410_v31 = vld [vmem:[%s1275_s3] sm:$0xff] }
  0x55   : > { %337 = vmatprep.subr.mxu0 %v272_v49  ;;  %794 = vmatprep.subr.mxu1 %v397_v32  ;;  %v957_v32 = vmov 0.0  }
  0x56   : > { %338 = vmatpush2.msra.mxu0 %v271_v50  ;;  %795 = vmatpush3.msra.mxu1 %v381_v33 }
  0x57   : > { %339 = vmatprep.subr.mxu0 %v270_v51  ;;  %796 = vmatprep.subr.mxu1 %v396_v34 }
  0x58   : > { %340 = vmatpush2.msra.mxu0 %v269_v52  ;;  %797 = vmatpush3.msra.mxu1 %v380_v35 }
  0x59   : > { %341 = vmatprep.subr.mxu0 %v268_v53  ;;  %798 = vmatprep.subr.mxu1 %v395_v36 }
  0x5a   : > { %342 = vmatpush2.msra.mxu0 %v267_v54  ;;  %799 = vmatpush3.msra.mxu1 %v379_v37 }
  0x5b   : > { %343 = vmatprep.subr.mxu0 %v266_v55  ;;  %800 = vmatprep.subr.mxu1 %v394_v38 }
  0x5c   : > { %344 = vmatpush2.msra.mxu0 %v265_v56  ;;  %801 = vmatpush3.msra.mxu1 %v378_v39 }
  0x5d   : > { %345 = vmatprep.subr.mxu0 %v264_v57  ;;  %572 = vmatprep.subr.mxu1 %v411_v30 }
  0x5e   : > { %346 = vmatpush2.msra.mxu0 %v263_v58 }
  0x5f   : > { %347 = vmatprep.subr.mxu0 %v262_v59 }
  0x60   : > { %348 = vmatpush2.msra.mxu0 %v261_v60 }
  0x61   : > { %349 = vmatprep.subr.mxu0 %v260_v61 }
  0x62   : > { %350 = vmatpush2.msra.mxu0 %v259_v62 }
  0x63   : > { %351 = vmatprep.subr.mxu0 %v258_v63 }
  0x64   : > { %352 = vmatpush2.msra.mxu0 %v257_v0 }
  0x65   : > { %354 = vmatmul.mubr.f32.vlgmr.msra.gmra.mxu0 %v217_v1 }
  0x66   : > { %359 = vmatprep.mubr.f32.mxu0 %v220_v2 }
  0x69   : > { %360 = vmatmul.mubr.f32.gmra.mxu0 %v219_v3 }
  0x6a   : > { %365 = vmatprep.mubr.f32.mxu0 %v222_v4 }
  0x6d   : > { %366 = vmatmul.mubr.f32.gmra.mxu0 %v221_v5 }
  0x6e   : > { %371 = vmatprep.mubr.f32.mxu0 %v224_v6 }
  0x71   : > { %372 = vmatmul.mubr.f32.gmra.mxu0 %v223_v7 }
 0x125   : > { %v1162_v40 = vpop.f32.mrf.mxu0 }
 0x126   : > { %v430_v47 = vmul.f32 %v1162_v40, %v1162_v40 }
 0x127   : > { %v1164_v41 = vpop.f32.mrf.mxu0 }
 0x128   : > { %v431_v50 = vmul.f32 %v1164_v41, %v1164_v41 }
 0x129   : > { %v1166_v42 = vpop.f32.mrf.mxu0 }
 0x12a   : > { %v432_v44 = vmul.f32 %v1166_v42, %v1166_v42  ;;  %v412_v48 = vadd.f32 %v1166_v42, %v1162_v40 }
 0x12b   : > { %v1168_v43 = vpop.f32.mrf.mxu0 }
 0x12c   : > { %v433_v45 = vmul.f32 %v1168_v43, %v1168_v43  ;;  %v438_v52 = vadd.f32 %v432_v44, %v430_v47  ;;  %v421_v53 = vadd.f32 %v1168_v43, %v1164_v41 }
 0x12d   : > { %v1174_v46 = vpop.f32.mrf.mxu0 }
 0x12e   : > { %v434_v49 = vmul.f32 %v1174_v46, %v1174_v46  ;;  %v413_v54 = vadd.f32 %v412_v48, %v1174_v46  ;;  %v447_v56 = vadd.f32 %v433_v45, %v431_v50  ;;  %v613_v48 = vlaneseq }
 0x12f   : > { %v1184_v51 = vpop.f32.mrf.mxu0 }
 0x130   : > { %v435_v55 = vmul.f32 %v1184_v51, %v1184_v51  ;;  %v439_v58 = vadd.f32 %v438_v52, %v434_v49  ;;  %v422_v59 = vadd.f32 %v421_v53, %v1184_v51  ;;  %v614_v49 = vshrl.u32 %v613_v48, 7 }
 0x131   : > { %v1191_v57 = vpop.f32.mrf.mxu0 }
 0x132   : > { %v414_v60 = vadd.f32 %v413_v54, %v1191_v57  ;;  %v436_v61 = vmul.f32 %v1191_v57, %v1191_v57  ;;  %v448_v62 = vadd.f32 %v447_v56, %v435_v55  ;;  %v615_v50 = vsub.s32 0, %v614_v49 }
 0x133   : > { %v1197_v63 = vpop.f32.mrf.mxu0  ;;  %v631_v52 = vsub.s32 1, %v614_v49 }
 0x134   : > { %v415_v0 = vrot.slane %v414_v60, 4  ;;  %v440_v1 = vadd.f32 %v439_v58, %v436_v61  ;;  %v423_v2 = vadd.f32 %v422_v59, %v1197_v63  ;;  %v437_v3 = vmul.f32 %v1197_v63, %v1197_v63 }
 0x136   : > { %v416_v4 = vadd.f32 %v415_v0, %v414_v60  ;;  %v441_v5 = vrot.slane %v440_v1, 4  ;;  %v424_v6 = vrot.slane %v423_v2, 4  ;;  %v449_v7 = vadd.f32 %v448_v62, %v437_v3 }
 0x138   : > { %v417_v8 = vrot.slane %v416_v4, 2  ;;  %v442_v9 = vadd.f32 %v441_v5, %v440_v1  ;;  %v425_v10 = vadd.f32 %v424_v6, %v423_v2  ;;  %v450_v11 = vrot.slane %v449_v7, 4 }
 0x13a   : > { %v443_v12 = vrot.slane %v442_v9, 2  ;;  %v426_v13 = vrot.slane %v425_v10, 2  ;;  %v451_v14 = vadd.f32 %v450_v11, %v449_v7  ;;  %v418_v15 = vadd.f32 %v417_v8, %v416_v4 }
 0x13c   : > { %v427_v16 = vadd.f32 %v426_v13, %v425_v10  ;;  %v452_v17 = vrot.slane %v451_v14, 2  ;;  %v444_v18 = vadd.f32 %v443_v12, %v442_v9  ;;  %v419_v22 = vrot.slane %v418_v15, 1 }
 0x13e   : > { %v428_v19 = vrot.slane %v427_v16, 1  ;;  %v453_v20 = vadd.f32 %v452_v17, %v451_v14  ;;  %v445_v21 = vrot.slane %v444_v18, 1  ;;  %v420_v27 = vadd.f32 %v419_v22, %v418_v15 }
 0x140   : > { %v454_v23 = vrot.slane %v453_v20, 1  ;;  %v446_v24 = vadd.f32 %v445_v21, %v444_v18  ;;  %v429_v25 = vadd.f32 %v428_v19, %v427_v16 }
 0x142   : > { %v455_v26 = vadd.f32 %v454_v23, %v453_v20  ;;  %v457_v29 = vsel %vm456_vm0, %v420_v27, %v446_v24 }
 0x144   : > { %v458_v28 = vsel %vm456_vm0, %v429_v25, %v455_v26 }
 0x145   : > { %523 = vmatprep.mubr.f32.mxu1 %v458_v28 }
 0x146   : > { %524 = vmatmul.mubr.f32.vlgmr.msra.gmra.mxu1 %v457_v29 }
 0x147   : > { %573 = vmatpush1.msra.mxu1 %v410_v31  ;;  %606 = vmatprep.mubr.f32.mxu1 %v957_v32 }
 0x206   : > { %v802_v33 = vpop.f32.mrf.mxu1 }
 0x208   : > { %v803_v34 = vpop.f32.mrf.mxu1 }
 0x209   : > { %v804_v35 = vadd.f32 %v803_v34, %v802_v33 }
 0x20b   : > { %v529_v36 = vmul.f32 %v804_v35, %v804_v35 }
 0x20d   : > { %v531_v37 = vrot.slane %v529_v36, 7 }
 0x20f   : > { %v533_v38 = vsub.f32 %v804_v35, %v531_v37 }
 0x211   : > { %v534_v39 = vmax.f32 %v533_v38, 0.0 }
 0x213   : > { %v535_v44 = vadd.f32 1e-05, %v534_v39 }
 0x215   : > { %860 = vrsqrt.f32 %v535_v44 }
 0x222   : > { %v861_v45 = vpop.eup %860 }
 0x223   : > { %v537_v47 = vsel %vm456_vm0, %v804_v35, %v861_v45 }
 0x224   : > { %760 = vmatmul.mubr.msk.f32.vlgmr.msra.gmra.mxu1 %vm538_vm1, %v537_v47 }
 0x2e4   : > { %v608_v53 = vpop.f32.mrf.mxu1 }
 0x2e5   : > { %v616_v54 = vrot.slane %v608_v53, %v615_v50  ;;  %v632_v55 = vrot.slane %v608_v53, %v631_v52 }
 0x2e6   : > { %v610_v56 = vpop.f32.mrf.mxu1 }
 0x2e7   : > { %v621_v58 = vsub.f32 %v1162_v40, %v616_v54  ;;  %v623_v59 = vsub.f32 %v1166_v42, %v616_v54  ;;  %v625_v60 = vsub.f32 %v1174_v46, %v616_v54  ;;  %v627_v61 = vsub.f32 %v1191_v57, %v616_v54 }
 0x2e8   : > { %v620_v62 = vrot.slane %v610_v56, %v615_v50  ;;  %v636_v0 = vrot.slane %v610_v56, %v631_v52 }
 0x2e9   : > { %v637_v1 = vmul.f32 %v632_v55, %v621_v58  ;;  %v639_v2 = vmul.f32 %v632_v55, %v623_v59  ;;  %v641_v3 = vmul.f32 %v632_v55, %v625_v60  ;;  %v643_v4 = vmul.f32 %v632_v55, %v627_v61 }
 0x2ea   : > { %v622_v5 = vsub.f32 %v1164_v41, %v620_v62  ;;  %v624_v6 = vsub.f32 %v1168_v43, %v620_v62  ;;  %v626_v7 = vsub.f32 %v1184_v51, %v620_v62  ;;  %v628_v40 = vsub.f32 %v1197_v63, %v620_v62 }
 0x2eb   : > { %v645_v42 = vmax.f32 %v637_v1, 0.0  ;;  %v647_v46 = vmax.f32 %v639_v2, 0.0  ;;  %v649_v57 = vmax.f32 %v641_v3, 0.0  ;;  %v651_v8 = vmax.f32 %v643_v4, 0.0 }
 0x2ec   : > { %v638_v9 = vmul.f32 %v636_v0, %v622_v5  ;;  %v640_v10 = vmul.f32 %v636_v0, %v624_v6  ;;  %v642_v11 = vmul.f32 %v636_v0, %v626_v7  ;;  %v644_v12 = vmul.f32 %v636_v0, %v628_v40 }
 0x2ed   : > { %653 = vst [vmem:[%s208_s23] sm:$0xff] %v645_v42  ;;  %655 = vst [vmem:[%s208_s23 + $0x10] sm:$0xff] %v647_v46 }
 0x2ee   : > { %657 = vst [vmem:[%s208_s23 + $0x20] sm:$0xff] %v649_v57  ;;  %659 = vst [vmem:[%s208_s23 + $0x30] sm:$0xff] %v651_v8  ;;  %v646_v41 = vmax.f32 %v638_v9, 0.0  ;;  %v648_v43 = vmax.f32 %v640_v10, 0.0  ;;  %v650_v51 = vmax.f32 %v642_v11, 0.0  ;;  %v652_v63 = vmax.f32 %v644_v12, 0.0 }
 0x2f0   : > { %654 = vst [vmem:[%s208_s23 + $0x8] sm:$0xff] %v646_v41  ;;  %656 = vst [vmem:[%s208_s23 + $0x18] sm:$0xff] %v648_v43 }
 0x2f1   : > { %658 = vst [vmem:[%s208_s23 + $0x28] sm:$0xff] %v650_v51  ;;  %660 = vst [vmem:[%s208_s23 + $0x38] sm:$0xff] %v652_v63 }
 0x2f2   : > { %901 = shalt.err (!%p898_p0)
}
 0x2f3   : > { %s902_s9 = scalar_lea.hbm %s1226_s19, 1024  ;;  %s906_s12 = scalar_lea.hbm %s1276_s4, 2048 }
 0x2f4   : > { %p903_p1 = scmp.ne.s32.totalorder %s1226_s19, %s902_s9  ;;  %p907_p4 = scmp.lt.s32.totalorder %s1226_s19, %s1276_s4 }
 0x2f5   : > { %p908_p7 = scmp.lt.s32.totalorder %s906_s12, %s902_s9 }
 0x2f6   : > { %p904_p2 = pnand %p903_p1, %p1024_p5 }
 0x2f7   : > { %p909_p6 = por %p908_p7, %p907_p4 }
 0x2f8   : > { %p905_p3 = pneg %p904_p2 }
 0x2fa   : > { %p910_p8 = pnand %p909_p6, %p905_p3 }
 0x2fc   : > { %913 = shalt.err (!%p910_p8)
}
 0x2fd   : > { %s959_s20 = smov 256   ;;  %s960_s22 = smov 16  }
 0x2fe   : > { %809 = dma.vmem_to_hbm [thread:$0]  (%p1024_p5), %s1228_s27, 1024, %s1226_s19, %s1232_s30, %s959_s20, %s959_s20, %s960_s22  }
 0x2ff PF: > { %p821_p9 = scmp.ge.s32.totalorder %s952_s18, 2  ;;  %s691_s23 = sand.u32 1, %s940_s15  }
 0x300   : > { %p1280_p10 = scmp.ne.s32.totalorder %s1278_s26, 0  ;;  %s692_s28 = scalar_lea.sflag [#allocation4], %s691_s23 }
 0x302   : > { %p816_p11 = pnand %p821_p9, %p1280_p10 }
 0x304   : > { %p817_p12 = pneg %p816_p11 }
 0x306   : > { %935 = dma.done.wait (%p817_p12), %s692_s28, 1024  }
 0x307   : > { %937 = vsyncadd (%p817_p12), %s692_s28, 4294966272  ;;  %p15_p13 = scmp.ge.s32.totalorder %s1011_s21, 4   ;;  %s1281_s15 = smov %s944_s16 }
 0x308   : > { %s1282_s16 = smov %s948_s17  ;;  %s1283_s17 = smov %s1022_s24 }
 0x309   : > { %s1284_s18 = smov %s1011_s21  ;;  %17 = sbr.rel (!%p15_p13) target bundleno = 4 (0x4), region = 76 }
 0x30e   :  { %697 = vsyncpa [#allocation3], 1 }
 0x30f   :  { %699 = vsyncpa [#allocation3 + $0x1], 1 }
 0x310   :  { %700 = vsyncpa [#allocation4], 1 }
 0x311   :  { %702 = vsyncpa [#allocation4 + $0x1], 1 }

</bundles_post_ra>
